<compile_context>
chip_gen: v6e
topology: v6e:2x2x1
jax: 0.10.0
libtpu: 0.0.40
codegen_flags: <defaults>
</compile_context>

<pallas_src>
import jax
import jax.numpy as jnp
from jax.experimental import pallas as pl
from jax.experimental.pallas import tpu as pltpu


def _round_up(v, m):
    return ((v + m - 1) // m) * m


def _pick_hidden_chunk(hidden, desired):
    """Return (th, hidden_pad). Prefer a multiple-of-256 chunk that divides hidden
    (matches 2x256^2 MXUs), then 128-granularity (v5e). If no clean divisor exists,
    zero-pad hidden to a multiple of the desired chunk (exact: padded units have zero
    weights/bias, GELU(0)=0, and zero rows of w2)."""
    desired = max(128, (desired // 128) * 128)
    for gran in (256, 128):
        t = (desired // gran) * gran
        while t >= gran:
            if hidden % t == 0:
                return t, hidden
            t -= gran
    return desired, _round_up(hidden, desired)


def _gelu_tanh(h):
    # naive_GELU (tanh approximation), f32 math:
    # 0.5 * h * (1 + tanh(sqrt(2/pi) * (h + 0.044715 * h^3)))
    c = jnp.float32(0.7978845608028654)  # sqrt(2/pi)
    h2 = h * h
    inner = c * h * (1.0 + jnp.float32(0.044715) * h2)
    return 0.5 * h * (1.0 + jnp.tanh(inner))


def _ffn_kernel_single(x_ref, w1_ref, b1_ref, w2_ref, b2_ref, o_ref):
    # Weights fully VMEM-resident (constant block index across the grid).
    h = jnp.dot(x_ref[...], w1_ref[...], preferred_element_type=jnp.float32)
    h = _gelu_tanh(h + b1_ref[...].astype(jnp.float32))
    out = jnp.dot(h.astype(w2_ref.dtype), w2_ref[...],
                  preferred_element_type=jnp.float32)
    o_ref[...] = (out + b2_ref[...].astype(jnp.float32)).astype(o_ref.dtype)


def _ffn_kernel_acc(x_ref, w1_ref, b1_ref, w2_ref, b2_ref, o_ref, acc_ref):
    # x_ref:  (tm, emb)   w1_ref: (emb, th)   b1_ref: (1, th)
    # w2_ref: (th, emb)   b2_ref: (1, emb)    o_ref:  (tm, emb)
    # acc_ref: (tm, emb) f32 accumulator, resident across the hidden-chunk axis.
    j = pl.program_id(1)

    @pl.when(j == 0)
    def _():
        acc_ref[...] = jnp.zeros_like(acc_ref)

    h = jnp.dot(x_ref[...], w1_ref[...], preferred_element_type=jnp.float32)
    h = _gelu_tanh(h + b1_ref[...].astype(jnp.float32))
    acc_ref[...] += jnp.dot(h.astype(w2_ref.dtype), w2_ref[...],
                            preferred_element_type=jnp.float32)

    @pl.when(j == pl.num_programs(1) - 1)
    def _():
        o_ref[...] = (acc_ref[...] + b2_ref[...].astype(jnp.float32)).astype(o_ref.dtype)


def feed_forward(x, w1, b1, w2, b2, *, tm=512, th=512,
                 compute_dtype=jnp.bfloat16, single_pass=None):
    """x: [batch, seq, emb]; w1: (emb, hidden); b1: (hidden,); w2: (hidden, emb);
    b2: (emb,). Returns [batch, seq, emb] in x.dtype."""
    batch, seq, emb = x.shape
    emb_in, hidden = w1.shape
    assert emb_in == emb and w2.shape == (hidden, emb)
    assert b1.shape == (hidden,) and b2.shape == (emb,)
    M = batch * seq
    out_dtype = x.dtype

    cdt = jnp.dtype(compute_dtype)
    wb = cdt.itemsize                     # bytes of the MXU operands (x, w1, w2)
    ob = jnp.dtype(out_dtype).itemsize

    # VMEM budget. v7x has only 64 MiB physical per TensorCore; v5e/v6e have 128 MiB.
    vmem_cap = 64 << 20
    try:
        vmem_cap = int(getattr(pltpu.get_tpu_info(), "vmem_capacity_bytes", vmem_cap))
    except Exception:
        pass
    budget = (vmem_cap * 85) // 100

    # Hidden-axis plan. Fast path when both (double-buffered) weights fit in VMEM:
    # th = hidden, weights DMA'd exactly once, no accumulator RMW.
    weights_fit = 2 * (2 * emb * hidden) * wb <= budget // 2
    if single_pass is None:
        single_pass = (hidden <= th) or weights_fit
    if single_pass:
        th_eff, hidden_pad = hidden, hidden
    else:
        th_eff, hidden_pad = _pick_hidden_chunk(hidden, th)

    # Per-row VMEM cost: double-buffered x and out tiles, f32 accumulator (chunked
    # path only), and the f32 + compute-dtype intermediate activation.
    if single_pass:
        per_row = 2 * emb * wb + 2 * emb * ob + hidden_pad * (4 + wb)
    else:
        per_row = 2 * emb * wb + 2 * emb * ob + 4 * emb + th_eff * (4 + wb)
    fixed = 2 * (2 * emb * th_eff) * wb + 2 * (th_eff + emb) * 4 + (1 << 20)

    tm_cap = max(8, ((budget - fixed) // max(per_row, 1)) // 8 * 8)
    tm = max(8, min(_round_up(tm, 8), _round_up(M, 8), tm_cap))
    M_pad = _round_up(M, tm)
    # Keep >= 2 M-tiles when rows allow so the parallel axis can use both v7x TCs.
    if M_pad // tm < 2 and M_pad >= 512:
        tm = _round_up(M_pad // 2, 8)
        M_pad = _round_up(M, tm)

    vmem_limit = int(min(max((fixed + tm * per_row) * 5 // 4, 16 << 20), budget))

    # Prepare operands: bf16 (compute_dtype) MXU inputs, zero-padded rows / hidden.
    x2d = x.reshape(M, emb).astype(cdt)
    if M_pad != M:
        x2d = jnp.pad(x2d, ((0, M_pad - M), (0, 0)))
    w1c = w1.astype(cdt)
    w2c = w2.astype(cdt)
    b1_2d = b1.reshape(1, hidden)
    b2_2d = b2.reshape(1, emb)
    if hidden_pad != hidden:
        w1c = jnp.pad(w1c, ((0, 0), (0, hidden_pad - hidden)))
        w2c = jnp.pad(w2c, ((0, hidden_pad - hidden), (0, 0)))
        b1_2d = jnp.pad(b1_2d, ((0, 0), (0, hidden_pad - hidden)))

    if single_pass:
        out = pl.pallas_call(
            _ffn_kernel_single,
            out_shape=jax.ShapeDtypeStruct((M_pad, emb), out_dtype),
            grid_spec=pltpu.PrefetchScalarGridSpec(
                num_scalar_prefetch=0,
                grid=(M_pad // tm,),
                in_specs=[
                    pl.BlockSpec((tm, emb), lambda i: (i, 0)),            # x tile
                    pl.BlockSpec((emb, hidden_pad), lambda i: (0, 0)),    # w1 (resident)
                    pl.BlockSpec((1, hidden_pad), lambda i: (0, 0)),      # b1
                    pl.BlockSpec((hidden_pad, emb), lambda i: (0, 0)),    # w2 (resident)
                    pl.BlockSpec((1, emb), lambda i: (0, 0)),             # b2
                ],
                out_specs=pl.BlockSpec((tm, emb), lambda i: (i, 0)),
            ),
            compiler_params=pltpu.CompilerParams(
                dimension_semantics=("parallel",),
                vmem_limit_bytes=vmem_limit,
            ),
        )(x2d, w1c, b1_2d, w2c, b2_2d)
    else:
        out = pl.pallas_call(
            _ffn_kernel_acc,
            out_shape=jax.ShapeDtypeStruct((M_pad, emb), out_dtype),
            grid_spec=pltpu.PrefetchScalarGridSpec(
                num_scalar_prefetch=0,
                grid=(M_pad // tm, hidden_pad // th_eff),
                in_specs=[
                    pl.BlockSpec((tm, emb), lambda i, j: (i, 0)),         # x tile
                    pl.BlockSpec((emb, th_eff), lambda i, j: (0, j)),     # w1 chunk (cols)
                    pl.BlockSpec((1, th_eff), lambda i, j: (0, j)),       # b1 chunk
                    pl.BlockSpec((th_eff, emb), lambda i, j: (j, 0)),     # w2 chunk (rows)
                    pl.BlockSpec((1, emb), lambda i, j: (0, 0)),          # b2
                ],
                out_specs=pl.BlockSpec((tm, emb), lambda i, j: (i, 0)),
                scratch_shapes=[pltpu.VMEM((tm, emb), jnp.float32)],
            ),
            compiler_params=pltpu.CompilerParams(
                dimension_semantics=("parallel", "arbitrary"),
                vmem_limit_bytes=vmem_limit,
            ),
        )(x2d, w1c, b1_2d, w2c, b2_2d)

    return out[:M].reshape(batch, seq, emb)


if __name__ == "__main__":
    def reference(x, w1, b1, w2, b2):
        emb = x.shape[-1]
        h = x.reshape(-1, emb) @ w1 + b1
        c = 0.7978845608028654
        h = 0.5 * h * (1.0 + jnp.tanh(c * (h + 0.044715 * h ** 3)))
        return (h @ w2 + b2).reshape(x.shape)

    key = jax.random.PRNGKey(0)

    # Config 1 (module spec: emb_dim=32 -> hidden=128): exercises the single-pass path.
    batch, seq, emb = 2, 8, 32
    hidden = 4 * emb
    kx, kw1, kb1, kw2, kb2 = jax.random.split(key, 5)
    x = jax.random.normal(kx, (batch, seq, emb), dtype=jnp.float32)
    w1 = jax.random.normal(kw1, (emb, hidden), dtype=jnp.float32) * 0.02
    b1 = jax.random.normal(kb1, (hidden,), dtype=jnp.float32) * 0.02
    w2 = jax.random.normal(kw2, (hidden, emb), dtype=jnp.float32) * 0.02
    b2 = jax.random.normal(kb2, (emb,), dtype=jnp.float32) * 0.02

    y = feed_forward(x, w1, b1, w2, b2)   # bf16 MXU operands, f32 accumulation
    jax.block_until_ready(y)
    y_ref = reference(x, w1, b1, w2, b2)
    assert jnp.allclose(y, y_ref, atol=5e-3, rtol=5e-2), \
        float(jnp.max(jnp.abs(y - y_ref)))

    # Config 2 (emb_dim=128 -> hidden=512): exercises the hidden-chunked accumulator path.
    batch2, seq2, emb2 = 2, 8, 128
    hidden2 = 4 * emb2
    k2 = jax.random.split(key, 10)
    x2 = jax.random.normal(k2[5], (batch2, seq2, emb2), dtype=jnp.float32)
    w1b = jax.random.normal(k2[6], (emb2, hidden2), dtype=jnp.float32) * 0.02
    b1b = jax.random.normal(k2[7], (hidden2,), dtype=jnp.float32) * 0.02
    w2b = jax.random.normal(k2[8], (hidden2, emb2), dtype=jnp.float32) * 0.02
    b2b = jax.random.normal(k2[9], (emb2,), dtype=jnp.float32) * 0.02

    y2 = feed_forward(x2, w1b, b1b, w2b, b2b, th=256, single_pass=False)
    jax.block_until_ready(y2)
    y2_ref = reference(x2, w1b, b1b, w2b, b2b)
    assert jnp.allclose(y2, y2_ref, atol=5e-3, rtol=5e-2), \
        float(jnp.max(jnp.abs(y2 - y2_ref)))

    print("KERNEL_OK")
</pallas_src>

<mosaic_0001>
module attributes {stable_mosaic.version = 11 : i64} {
  func.func @_ffn_kernel_single(%arg0: i32, %arg1: memref<16x32xbf16, #tpu.memory_space<vmem>>, %arg2: memref<32x128xbf16, #tpu.memory_space<vmem>>, %arg3: memref<1x128xf32, #tpu.memory_space<vmem>>, %arg4: memref<128x32xbf16, #tpu.memory_space<vmem>>, %arg5: memref<1x32xf32, #tpu.memory_space<vmem>>, %arg6: memref<16x32xf32, #tpu.memory_space<vmem>>) attributes {dimension_semantics = [#tpu.dimension_semantics<parallel>], iteration_bounds = array<i64: 1>, scalar_prefetch = 0 : i64, scratch_operands = 0 : i64, tpu.core_type = #tpu.core_type<tc>, window_params = [{transform_indices = @transform_0, window_bounds = array<i64: 16, 32>}, {pipeline_mode = #tpu.pipeline_mode<synchronous>, transform_indices = @transform_1, window_bounds = array<i64: 32, 128>}, {pipeline_mode = #tpu.pipeline_mode<synchronous>, transform_indices = @transform_2, window_bounds = array<i64: 1, 128>}, {pipeline_mode = #tpu.pipeline_mode<synchronous>, transform_indices = @transform_3, window_bounds = array<i64: 128, 32>}, {pipeline_mode = #tpu.pipeline_mode<synchronous>, transform_indices = @transform_4, window_bounds = array<i64: 1, 32>}, {transform_indices = @transform_5, window_bounds = array<i64: 16, 32>}]} {
    %c0 = arith.constant 0 : index
    %c0_0 = arith.constant 0 : index
    %0 = vector.load %arg1[%c0, %c0_0] : memref<16x32xbf16, #tpu.memory_space<vmem>>, vector<16x32xbf16>
    %c0_1 = arith.constant 0 : index
    %c0_2 = arith.constant 0 : index
    %1 = vector.load %arg2[%c0_1, %c0_2] : memref<32x128xbf16, #tpu.memory_space<vmem>>, vector<32x128xbf16>
    %cst = arith.constant dense<0.000000e+00> : vector<16x128xf32>
    %2 = tpu.matmul %0, %1, %cst {dimension_numbers = #tpu.dot_dimension_numbers<[1], [0], [0], [1], [0, 0, 1, 1], [], []>} : vector<16x32xbf16>, vector<32x128xbf16>, vector<16x128xf32> -> vector<16x128xf32>
    %c0_3 = arith.constant 0 : index
    %c0_4 = arith.constant 0 : index
    %3 = vector.load %arg3[%c0_3, %c0_4] : memref<1x128xf32, #tpu.memory_space<vmem>>, vector<1x128xf32>
    %4 = vector.broadcast %3 : vector<1x128xf32> to vector<16x128xf32>
    %5 = arith.addf %2, %4 : vector<16x128xf32>
    %6 = arith.mulf %5, %5 : vector<16x128xf32>
    %cst_5 = arith.constant 0.797884583 : f32
    %7 = vector.broadcast %cst_5 : f32 to vector<16x128xf32>
    %8 = arith.mulf %7, %5 : vector<16x128xf32>
    %cst_6 = arith.constant 4.471500e-02 : f32
    %9 = vector.broadcast %cst_6 : f32 to vector<16x128xf32>
    %10 = arith.mulf %9, %6 : vector<16x128xf32>
    %cst_7 = arith.constant 1.000000e+00 : f32
    %11 = vector.broadcast %cst_7 : f32 to vector<16x128xf32>
    %12 = arith.addf %11, %10 : vector<16x128xf32>
    %13 = arith.mulf %8, %12 : vector<16x128xf32>
    %cst_8 = arith.constant 5.000000e-01 : f32
    %14 = vector.broadcast %cst_8 : f32 to vector<16x128xf32>
    %15 = arith.mulf %14, %5 : vector<16x128xf32>
    %16 = math.tanh %13 : vector<16x128xf32>
    %cst_9 = arith.constant 1.000000e+00 : f32
    %17 = vector.broadcast %cst_9 : f32 to vector<16x128xf32>
    %18 = arith.addf %17, %16 : vector<16x128xf32>
    %19 = arith.mulf %15, %18 : vector<16x128xf32>
    %20 = arith.truncf %19 : vector<16x128xf32> to vector<16x128xbf16>
    %c0_10 = arith.constant 0 : index
    %c0_11 = arith.constant 0 : index
    %21 = vector.load %arg4[%c0_10, %c0_11] : memref<128x32xbf16, #tpu.memory_space<vmem>>, vector<128x32xbf16>
    %cst_12 = arith.constant dense<0.000000e+00> : vector<16x32xf32>
    %22 = tpu.matmul %20, %21, %cst_12 {dimension_numbers = #tpu.dot_dimension_numbers<[1], [0], [0], [1], [0, 0, 1, 1], [], []>} : vector<16x128xbf16>, vector<128x32xbf16>, vector<16x32xf32> -> vector<16x32xf32>
    %c0_13 = arith.constant 0 : index
    %c0_14 = arith.constant 0 : index
    %23 = vector.load %arg5[%c0_13, %c0_14] : memref<1x32xf32, #tpu.memory_space<vmem>>, vector<1x32xf32>
    %24 = vector.broadcast %23 : vector<1x32xf32> to vector<16x32xf32>
    %25 = arith.addf %22, %24 : vector<16x32xf32>
    %c0_15 = arith.constant 0 : index
    %c0_16 = arith.constant 0 : index
    %26 = vector.load %arg6[%c0_15, %c0_16] : memref<16x32xf32, #tpu.memory_space<vmem>>, vector<16x32xf32>
    tpu.vector_store %arg6[%c0_15, %c0_16], %25 {strides = array<i32>} : memref<16x32xf32, #tpu.memory_space<vmem>>, vector<16x32xf32>,
    return
  }
  func.func @transform_0(%arg0: i32) -> (i32, i32) {
    %c0_i32 = arith.constant 0 : i32
    %c0_i32_0 = arith.constant 0 : i32
    return %arg0, %c0_i32 : i32, i32
  }
  func.func @transform_1(%arg0: i32) -> (i32, i32) {
    %c0_i32 = arith.constant 0 : i32
    %c0_i32_0 = arith.constant 0 : i32
    %c0_i32_1 = arith.constant 0 : i32
    return %c0_i32, %c0_i32_0 : i32, i32
  }
  func.func @transform_2(%arg0: i32) -> (i32, i32) {
    %c0_i32 = arith.constant 0 : i32
    %c0_i32_0 = arith.constant 0 : i32
    %c0_i32_1 = arith.constant 0 : i32
    return %c0_i32, %c0_i32_0 : i32, i32
  }
  func.func @transform_3(%arg0: i32) -> (i32, i32) {
    %c0_i32 = arith.constant 0 : i32
    %c0_i32_0 = arith.constant 0 : i32
    %c0_i32_1 = arith.constant 0 : i32
    return %c0_i32, %c0_i32_0 : i32, i32
  }
  func.func @transform_4(%arg0: i32) -> (i32, i32) {
    %c0_i32 = arith.constant 0 : i32
    %c0_i32_0 = arith.constant 0 : i32
    %c0_i32_1 = arith.constant 0 : i32
    return %c0_i32, %c0_i32_0 : i32, i32
  }
  func.func @transform_5(%arg0: i32) -> (i32, i32) {
    %c0_i32 = arith.constant 0 : i32
    %c0_i32_0 = arith.constant 0 : i32
    return %arg0, %c0_i32 : i32, i32
  }
}

</mosaic_0001>

<bundles_post_ra>
// kernel: tpu_custom_call.1
= control target key start
LH: loop header
LB: loop body
LE: loop exit
PB: predicated region body
PF: predicated region fallthrough
CT: control target
= control target key end

     0   :  { %v342_v1 = vmov 0.0   ;;  %vm343_vm0 = vmmov 0   ;;  %vm52_vm1 = vcmask 261120   ;;  %s422_s0 = inlined_call_operand.vmem [shape: bf16[16,32], index: 0, kind: input, shape index: {}]   ;;  %s423_s1 = inlined_call_operand.vmem [shape: bf16[32,128], index: 1, kind: input, shape index: {}]   ;;  %s424_s2 = inlined_call_operand.vmem [shape: f32[1,128], index: 2, kind: input, shape index: {}]   ;;  %s425_s3 = inlined_call_operand.vmem [shape: bf16[128,32], index: 3, kind: input, shape index: {}]   ;;  %s426_s4 = inlined_call_operand.vmem [shape: f32[1,32], index: 4, kind: input, shape index: {}]   ;;  %s427_s5 = inlined_call_operand.hbm [shape: f32[16,32], index: 5, kind: output, shape index: {}]  }
   0x1   :  { %v305_v0 = vld [vmem:[%s423_s1 + $0x8] sm:$0xff]   ;;  %272 = vmatprep.subr.bf16.mxu0 %v342_v1  ;;  %280 = vmatprep.subr.bf16.mxu1 %v342_v1  ;;  %v306_v2 = vld [vmem:[%s423_s1] sm:$0xff]  }
   0x2   :  { %273 = vmatpush3.bf16.msra.mxu0 %v305_v0  ;;  %276 = vmatprep.mubr.msk.bf16.mxu0 %vm343_vm0, %v342_v1  ;;  %v307_v3 = vld [vmem:[%s422_s0] sm:$0xff]  }
   0x3   :  { %274 = vmatprep.subr.bf16.mxu0 %v342_v1  ;;  %296 = vmatprep.mubr.msk.bf16.mxu1 %vm343_vm0, %v342_v1 }
   0x6   :  { %275 = vmatpush3.bf16.msra.mxu0 %v306_v2 }
   0x7   :  { %10 = vsyncpa [#allocation3], 0  ;;  %v308_v4 = vld [vmem:[%s425_s3 + $0x38] sm:$0xff]   ;;  %v309_v5 = vld [vmem:[%s425_s3 + $0x30] sm:$0xff]   ;;  %s344_s15 = smov [#allocation2]  }
   0x8   :  { %281 = vmatpush3.bf16.msra.mxu1 %v308_v4  ;;  %v310_v6 = vld [vmem:[%s425_s3 + $0x28] sm:$0xff]   ;;  %v311_v7 = vld [vmem:[%s425_s3 + $0x20] sm:$0xff]   ;;  %v312_v8 = vld [vmem:[%s425_s3 + $0x18] sm:$0xff]   ;;  %s235_s16 = sshll.u32 %s344_s15, 4  ;;  %s236_s16 = int_to_ptr.vmem [resolvable:$true] %s235_s16 }
   0x9   :  { %277 = vmatmul.mubr.msk.bf16.vlgmr.msra.gmra.mxu0 %vm52_vm1, %v307_v3  ;;  %282 = vmatprep.subr.bf16.mxu1 %v342_v1  ;;  %v313_v9 = vld [vmem:[%s425_s3 + $0x10] sm:$0xff]   ;;  %v314_v10 = vld [vmem:[%s425_s3 + $0x8] sm:$0xff]   ;;  %v315_v11 = vld [vmem:[%s425_s3] sm:$0xff]   ;;  %s320_s17 = scalar_lea.vmem %s236_s16, 256  ;;  %p325_p1 = scmp.lt.s32.totalorder %s236_s16, %s236_s16 }
   0xa   :  { %v246_v12 = vld [vmem:[%s424_s2] ss:$0 sm:$0xff]  ;;  %p321_p0 = scmp.ne.s32.totalorder %s236_s16, %s320_s17  ;;  %p326_p2 = scmp.lt.s32.totalorder %s320_s17, %s320_s17 }
   0xb   :  { %v251_v38 = vld [vmem:[%s426_s4] ss:$0 sm:$0xff] }
   0xc   :  { %283 = vmatpush3.bf16.msra.mxu1 %v309_v5  ;;  %p327_p3 = por %p326_p2, %p325_p1 }
   0xd   :  { %284 = vmatprep.subr.bf16.mxu1 %v342_v1 }
   0xe   :  { %p328_p4 = pnand %p327_p3, %p321_p0 }
  0x10   :  { %285 = vmatpush3.bf16.msra.mxu1 %v310_v6 }
  0x11   :  { %286 = vmatprep.subr.bf16.mxu1 %v342_v1 }
  0x14   :  { %287 = vmatpush3.bf16.msra.mxu1 %v311_v7 }
  0x15   :  { %288 = vmatprep.subr.bf16.mxu1 %v342_v1 }
  0x18   :  { %289 = vmatpush3.bf16.msra.mxu1 %v312_v8 }
  0x19   :  { %290 = vmatprep.subr.bf16.mxu1 %v342_v1 }
  0x1c   :  { %291 = vmatpush3.bf16.msra.mxu1 %v313_v9 }
  0x1d   :  { %292 = vmatprep.subr.bf16.mxu1 %v342_v1 }
  0x20   :  { %293 = vmatpush3.bf16.msra.mxu1 %v314_v10 }
  0x21   :  { %294 = vmatprep.subr.bf16.mxu1 %v342_v1 }
  0x24   :  { %295 = vmatpush3.bf16.msra.mxu1 %v315_v11 }
  0xc9   :  { %v90_v13 = vpop.f32.mrf.mxu0 }
  0xca   :  { %v91_v14 = vadd.f32 %v246_v12, %v90_v13 }
  0xcb   :  { %v278_v15 = vpop.f32.mrf.mxu0 }
  0xcc   :  { %v97_v16 = vmul.f32 %v91_v14, %v91_v14  ;;  %v99_v21 = vmul.f32 0.7978846, %v91_v14  ;;  %v107_v32 = vmul.f32 0.5, %v91_v14 }
  0xcd   :  { %v93_v17 = vpop.f32.mrf.mxu0 }
  0xce   :  { %v101_v18 = vmul.f32 0.044715, %v97_v16  ;;  %v94_v19 = vadd.f32 %v246_v12, %v93_v17 }
  0xcf   :  { %v279_v20 = vpop.f32.mrf.mxu0 }
  0xd0   :  { %v103_v22 = vadd.f32 1.0, %v101_v18  ;;  %v98_v23 = vmul.f32 %v94_v19, %v94_v19  ;;  %v100_v26 = vmul.f32 0.7978846, %v94_v19  ;;  %v108_v33 = vmul.f32 0.5, %v94_v19 }
  0xd2   :  { %v105_v24 = vmul.f32 %v103_v22, %v99_v21  ;;  %v102_v25 = vmul.f32 0.044715, %v98_v23 }
  0xd4   :  { %316 = vtanh.f32 %v105_v24  ;;  %v104_v27 = vadd.f32 1.0, %v102_v25 }
  0xd6   :  { %v106_v28 = vmul.f32 %v104_v27, %v100_v26 }
  0xd8   :  { %318 = vtanh.f32 %v106_v28 }
  0xe1   :  { %v317_v29 = vpop.eup %316 }
  0xe2   :  { %v111_v30 = vadd.f32 1.0, %v317_v29 }
  0xe4   :  { %v113_v35 = vmul.f32 %v111_v30, %v107_v32 }
  0xe5   :  { %v319_v31 = vpop.eup %318 }
  0xe6   :  { %v112_v34 = vadd.f32 1.0, %v319_v31 }
  0xe8   :  { %v114_v36 = vmul.f32 %v112_v34, %v108_v33 }
  0xea   :  { %v115_v37 = vpack.c.bf16 %v114_v36, %v113_v35 }
  0xec   :  { %297 = vmatmul.mubr.bf16.vlgmr.msra.gmra.mxu1 %v115_v37 }
 0x1ac   :  { %v221_v39 = vpop.f32.mrf.mxu1 }
 0x1ad   :  { %v222_v40 = vadd.f32 %v251_v38, %v221_v39 }
 0x1ae   :  { %v298_v41 = vpop.f32.mrf.mxu1 }
 0x1af   :  { %228 = vst.msk [vmem:[#allocation2] sm:$0xff] %vm52_vm1, %v222_v40 }
 0x1b0   :  { %v224_v42 = vpop.f32.mrf.mxu1 }
 0x1b1   :  { %v225_v43 = vadd.f32 %v251_v38, %v224_v42 }
 0x1b2   :  { %v299_v44 = vpop.f32.mrf.mxu1 }
 0x1b3   :  { %229 = vst.msk [vmem:[#allocation2 + $0x8] sm:$0xff] %vm52_vm1, %v225_v43 }
 0x1b4   :  { %331 = shalt.err (!%p328_p4)
}
 0x1b5   :  { %s345_s4 = smov 128   ;;  %s346_s18 = smov 8  }
 0x1b6   :  { %241 = dma.vmem_to_hbm [thread:$0]  %s236_s16, 256, %s427_s5, [#allocation3], %s345_s4, %s345_s4, %s346_s18  }
 0x1b7   :  { %340 = dma.done.wait [#allocation3], 256  }
 0x1b8   :  { %341 = vsyncadd [#allocation3], 4294967040 }
 0x1b9   :  { %245 = vsyncpa [#allocation3], 1 }

</bundles_post_ra>
